<compile_context>
chip_gen: v7x
topology: tpu7x:2x2x1
jax: 0.10.0
libtpu: 0.0.40
codegen_flags: <defaults>
</compile_context>

<pallas_src>
import functools

import jax
import jax.numpy as jnp
from jax.experimental import pallas as pl
from jax.experimental.pallas import tpu as pltpu

DATA_DIM = 4
H0 = 32
H1 = 32
LANE = 128


# ---------------------------------------------------------------------------
# Kernel
# ---------------------------------------------------------------------------
def _disc_kernel(x_ref, w1t_ref, b1_ref, w23t_ref, b23_ref, o_ref):
    """One batch tile.

    x_ref   : (nc, DATA_DIM, chunk)  feature-major, batch on lanes (lane-dense)
    w1t_ref : (H0, DATA_DIM)         W1^T
    b1_ref  : (H0, 1)                b1^T
    w23t_ref: (1, H0)                (W2 @ W3)^T
    b23_ref : (1,)  in SMEM          folded scalar bias
    o_ref   : (nc, chunk)            sigmoid outputs, lane-dense rows
    """
    w1t = w1t_ref[...]
    b1 = b1_ref[...]
    w23t = w23t_ref[...]
    b23 = b23_ref[0]                      # scalar read from SMEM
    nc = o_ref.shape[0]

    # Inner chunk loop keeps the live (H0, chunk) f32 intermediate small while the
    # grid tile (and hence the pipelined DMA) is large.
    @pl.loop(0, nc)
    def _chunk(c):
        xT = x_ref[c]                                                 # (4, chunk)
        h = jnp.dot(w1t, xT, preferred_element_type=jnp.float32)      # MXU (32, chunk)
        h = jnp.maximum(h + b1, 0.0)                                  # bias + ReLU (VPU)
        y = jnp.dot(w23t, h, preferred_element_type=jnp.float32)      # MXU (1, chunk)
        o_ref[pl.ds(c, 1), :] = jax.nn.sigmoid(y + b23)               # EUP sigmoid, dense vst


# ---------------------------------------------------------------------------
# Tiling plan / packing / forward
# ---------------------------------------------------------------------------
def _tile_plan(batch, batch_tile, chunk_size):
    """Returns (num_tiles, nc, chunk). Tile = nc * chunk samples, chunk % 128 == 0."""
    b_min = pl.cdiv(batch, LANE) * LANE
    target = max(LANE, min(batch_tile, b_min))
    num_tiles = pl.cdiv(b_min, target)
    # v7x megacore: keep >=2 grid steps along the "parallel" batch axis when possible.
    if b_min >= 2 * LANE:
        num_tiles = max(num_tiles, 2)
    tile0 = pl.cdiv(pl.cdiv(b_min, num_tiles), LANE) * LANE
    chunk = pl.cdiv(max(LANE, min(chunk_size, tile0)), LANE) * LANE
    nc = pl.cdiv(tile0, chunk)
    return num_tiles, nc, chunk


def pack_inputs(x, num_tiles, nc, chunk, dtype=jnp.float32):
    """(B, 4) -> (num_tiles, nc, DATA_DIM, chunk) feature-major packed layout.

    One fused pad+reshape+transpose pass under jit. Upstream producers can emit /
    cache this layout directly to remove the pass entirely.
    """
    batch = x.shape[0]
    padded = num_tiles * nc * chunk
    xp = jnp.pad(x.astype(dtype), ((0, padded - batch), (0, 0)))
    return xp.reshape(num_tiles, nc, chunk, DATA_DIM).transpose(0, 1, 3, 2)


def fold_params(params, dtype=jnp.float32):
    """Fold Linear(32->32)->Linear(32->1) (no activation in between) and transpose.

    Call once; reuse the result for every forward. dtype=jnp.bfloat16 enables the
    optional reduced-HBM-traffic path (biases stay f32).
    """
    w1, b1, w2, b2, w3, b3 = params
    w23 = w2 @ w3                                   # (H0, 1)
    b23 = (b2 @ w3 + b3).reshape(1)                 # (1,) scalar for SMEM
    w1t = jnp.transpose(w1).astype(dtype)           # (H0, DATA_DIM)
    b1t = jnp.transpose(b1).astype(jnp.float32)     # (H0, 1)
    w23t = jnp.transpose(w23).astype(dtype)         # (1, H0)
    return (w1t, b1t, w23t, b23.astype(jnp.float32))


def _forward_packed(x4, w1t, b1t, w23t, b23):
    num_tiles, nc, _, chunk = x4.shape
    return pl.pallas_call(
        _disc_kernel,
        out_shape=jax.ShapeDtypeStruct((num_tiles, nc, chunk), jnp.float32),
        grid=(num_tiles,),
        in_specs=[
            pl.BlockSpec((None, nc, DATA_DIM, chunk), lambda i: (i, 0, 0, 0)),
            pl.BlockSpec((H0, DATA_DIM), lambda i: (0, 0)),
            pl.BlockSpec((H0, 1), lambda i: (0, 0)),
            pl.BlockSpec((1, H0), lambda i: (0, 0)),
            pl.BlockSpec(memory_space=pltpu.MemorySpace.SMEM),   # b23 scalar
        ],
        out_specs=pl.BlockSpec((None, nc, chunk), lambda i: (i, 0, 0)),
        compiler_params=pltpu.CompilerParams(
            dimension_semantics=("parallel",)),
    )(x4, w1t, b1t, w23t, b23)


@functools.partial(jax.jit, static_argnames=("batch_tile", "chunk_size"))
def discriminator_forward(x, folded_params, batch_tile=32768, chunk_size=512):
    """x: (B, DATA_DIM) float32, folded_params from fold_params() -> (B, 1) float32."""
    w1t, b1t, w23t, b23 = folded_params
    batch = x.shape[0]
    num_tiles, nc, chunk = _tile_plan(batch, batch_tile, chunk_size)
    x4 = pack_inputs(x, num_tiles, nc, chunk, dtype=w1t.dtype)
    out = _forward_packed(x4, w1t, b1t, w23t, b23)
    # (num_tiles, nc, chunk) is batch-ordered row-major: free reshape, tiny tail slice.
    return out.reshape(-1)[:batch].reshape(batch, 1)


# ---------------------------------------------------------------------------
# Reference / init (match the PyTorch module)
# ---------------------------------------------------------------------------
def init_params(key):
    """Deterministic init mimicking PyTorch Linear (uniform +-1/sqrt(fan_in))."""
    ks = jax.random.split(key, 6)

    def lin(kw, kb, fan_in, fan_out):
        bound = 1.0 / jnp.sqrt(fan_in)
        w = jax.random.uniform(kw, (fan_in, fan_out), jnp.float32, -bound, bound)
        b = jax.random.uniform(kb, (1, fan_out), jnp.float32, -bound, bound)
        return w, b

    w1, b1 = lin(ks[0], ks[1], DATA_DIM, H0)
    w2, b2 = lin(ks[2], ks[3], H0, H1)
    w3, b3 = lin(ks[4], ks[5], H1, 1)
    return (w1, b1, w2, b2, w3, b3)


def reference_forward(x, params):
    """Unfolded reference matching the PyTorch module exactly."""
    w1, b1, w2, b2, w3, b3 = params
    h = jnp.maximum(x @ w1 + b1, 0.0)
    h = h @ w2 + b2
    y = h @ w3 + b3
    return jax.nn.sigmoid(y)


if __name__ == "__main__":
    key = jax.random.PRNGKey(0)
    k_param, k_x1, k_x2 = jax.random.split(key, 3)

    params = init_params(k_param)
    folded = fold_params(params)          # hoisted: done once, reused every call

    # Small case consistent with the module (batch=8, features=4).
    x_small = jax.random.normal(k_x1, (8, DATA_DIM), dtype=jnp.float32)
    out_small = jax.block_until_ready(discriminator_forward(x_small, folded))
    ref_small = reference_forward(x_small, params)
    assert out_small.shape == (8, 1)
    assert jnp.allclose(out_small, ref_small, atol=1e-5, rtol=1e-5), "small batch mismatch"

    # Multi-tile grid + inner chunk loop + ragged batch (still small & fast).
    x_big = jax.random.normal(k_x2, (3000, DATA_DIM), dtype=jnp.float32)
    out_big = jax.block_until_ready(
        discriminator_forward(x_big, folded, batch_tile=1024, chunk_size=256))
    ref_big = reference_forward(x_big, params)
    assert out_big.shape == (3000, 1)
    assert jnp.allclose(out_big, ref_big, atol=1e-5, rtol=1e-5), "large batch mismatch"

    print("KERNEL_OK")
</pallas_src>

<mosaic_0001>
module attributes {stable_mosaic.version = 11 : i64} {
  func.func @_disc_kernel(%arg0: i32, %arg1: memref<1x1x4x128xf32, #tpu.memory_space<vmem>>, %arg2: memref<32x4xf32, #tpu.memory_space<vmem>>, %arg3: memref<32x1xf32, #tpu.memory_space<vmem>>, %arg4: memref<1x32xf32, #tpu.memory_space<vmem>>, %arg5: memref<1xf32, #tpu.memory_space<smem>>, %arg6: memref<1x1x128xf32, #tpu.memory_space<vmem>>) attributes {dimension_semantics = [#tpu.dimension_semantics<parallel>], iteration_bounds = array<i64: 1>, scalar_prefetch = 0 : i64, scratch_operands = 0 : i64, tpu.core_type = #tpu.core_type<tc>, window_params = [{transform_indices = @transform_0, window_bounds = array<i64: 1, 1, 4, 128>}, {pipeline_mode = #tpu.pipeline_mode<synchronous>, transform_indices = @transform_1, window_bounds = array<i64: 32, 4>}, {pipeline_mode = #tpu.pipeline_mode<synchronous>, transform_indices = @transform_2, window_bounds = array<i64: 32, 1>}, {pipeline_mode = #tpu.pipeline_mode<synchronous>, transform_indices = @transform_3, window_bounds = array<i64: 1, 32>}, {transform_indices = @transform_4, window_bounds = array<i64: 1>}, {transform_indices = @transform_5, window_bounds = array<i64: 1, 1, 128>}]} {
    %c0 = arith.constant 0 : index
    %c0_0 = arith.constant 0 : index
    %0 = vector.load %arg2[%c0, %c0_0] : memref<32x4xf32, #tpu.memory_space<vmem>>, vector<32x4xf32>
    %c0_1 = arith.constant 0 : index
    %c0_2 = arith.constant 0 : index
    %1 = vector.load %arg3[%c0_1, %c0_2] : memref<32x1xf32, #tpu.memory_space<vmem>>, vector<32x1xf32>
    %c0_3 = arith.constant 0 : index
    %c0_4 = arith.constant 0 : index
    %2 = vector.load %arg4[%c0_3, %c0_4] : memref<1x32xf32, #tpu.memory_space<vmem>>, vector<1x32xf32>
    %c0_5 = arith.constant 0 : index
    %3 = memref.load %arg5[%c0_5] : memref<1xf32, #tpu.memory_space<smem>>
    %c0_i32 = arith.constant 0 : i32
    %c1_i32 = arith.constant 1 : i32
    %4 = arith.muli %c0_i32, %c1_i32 : i32
    %c0_i32_6 = arith.constant 0 : i32
    %5 = arith.addi %c0_i32_6, %4 : i32
    %c0_7 = arith.constant 0 : index
    %6 = arith.index_cast %5 : i32 to index
    %c0_8 = arith.constant 0 : index
    %c0_9 = arith.constant 0 : index
    %7 = vector.load %arg1[%c0_7, %6, %c0_8, %c0_9] : memref<1x1x4x128xf32, #tpu.memory_space<vmem>>, vector<1x1x4x128xf32>
    %8 = vector.shape_cast %7 : vector<1x1x4x128xf32> to vector<4x128xf32>
    %cst = arith.constant dense<0.000000e+00> : vector<32x128xf32>
    %9 = tpu.matmul %0, %8, %cst {dimension_numbers = #tpu.dot_dimension_numbers<[1], [0], [0], [1], [0, 0, 1, 1], [], []>} : vector<32x4xf32>, vector<4x128xf32>, vector<32x128xf32> -> vector<32x128xf32>
    %10 = vector.broadcast %1 : vector<32x1xf32> to vector<32x128xf32>
    %11 = arith.addf %9, %10 : vector<32x128xf32>
    %cst_10 = arith.constant 0.000000e+00 : f32
    %12 = vector.broadcast %cst_10 : f32 to vector<32x128xf32>
    %13 = arith.maximumf %11, %12 : vector<32x128xf32>
    %cst_11 = arith.constant dense<0.000000e+00> : vector<1x128xf32>
    %14 = tpu.matmul %2, %13, %cst_11 {dimension_numbers = #tpu.dot_dimension_numbers<[1], [0], [0], [1], [0, 0, 1, 1], [], []>} : vector<1x32xf32>, vector<32x128xf32>, vector<1x128xf32> -> vector<1x128xf32>
    %15 = vector.broadcast %3 : f32 to vector<1x128xf32>
    %16 = arith.addf %14, %15 : vector<1x128xf32>
    %17 = arith.negf %16 : vector<1x128xf32>
    %18 = math.exp %17 : vector<1x128xf32>
    %cst_12 = arith.constant 1.000000e+00 : f32
    %19 = vector.broadcast %cst_12 : f32 to vector<1x128xf32>
    %20 = arith.addf %19, %18 : vector<1x128xf32>
    %21 = arith.divf %19, %20 : vector<1x128xf32>
    %c0_13 = arith.constant 0 : index
    %22 = arith.index_cast %5 : i32 to index
    %c0_14 = arith.constant 0 : index
    %23 = vector.load %arg6[%c0_13, %22, %c0_14] : memref<1x1x128xf32, #tpu.memory_space<vmem>>, vector<1x1x128xf32>
    %24 = vector.shape_cast %23 : vector<1x1x128xf32> to vector<1x128xf32>
    %25 = vector.shape_cast %21 : vector<1x128xf32> to vector<1x1x128xf32>
    tpu.vector_store %arg6[%c0_13, %22, %c0_14], %25 {strides = array<i32>} : memref<1x1x128xf32, #tpu.memory_space<vmem>>, vector<1x1x128xf32>,
    %c1_i32_15 = arith.constant 1 : i32
    return
  }
  func.func @transform_0(%arg0: i32) -> (i32, i32, i32, i32) {
    %c0_i32 = arith.constant 0 : i32
    %c0_i32_0 = arith.constant 0 : i32
    %c0_i32_1 = arith.constant 0 : i32
    %c0_i32_2 = arith.constant 0 : i32
    return %arg0, %c0_i32, %c0_i32_0, %c0_i32_1 : i32, i32, i32, i32
  }
  func.func @transform_1(%arg0: i32) -> (i32, i32) {
    %c0_i32 = arith.constant 0 : i32
    %c0_i32_0 = arith.constant 0 : i32
    %c0_i32_1 = arith.constant 0 : i32
    return %c0_i32, %c0_i32_0 : i32, i32
  }
  func.func @transform_2(%arg0: i32) -> (i32, i32) {
    %c0_i32 = arith.constant 0 : i32
    %c0_i32_0 = arith.constant 0 : i32
    %c0_i32_1 = arith.constant 0 : i32
    return %c0_i32, %c0_i32_0 : i32, i32
  }
  func.func @transform_3(%arg0: i32) -> (i32, i32) {
    %c0_i32 = arith.constant 0 : i32
    %c0_i32_0 = arith.constant 0 : i32
    %c0_i32_1 = arith.constant 0 : i32
    return %c0_i32, %c0_i32_0 : i32, i32
  }
  func.func @transform_4(%arg0: i32) -> i32 {
    %c0_i32 = arith.constant 0 : i32
    %c0_i32_0 = arith.constant 0 : i32
    return %c0_i32 : i32
  }
  func.func @transform_5(%arg0: i32) -> (i32, i32, i32) {
    %c0_i32 = arith.constant 0 : i32
    %c0_i32_0 = arith.constant 0 : i32
    %c0_i32_1 = arith.constant 0 : i32
    return %arg0, %c0_i32, %c0_i32_0 : i32, i32, i32
  }
}

</mosaic_0001>

<bundles_post_ra>
// kernel: discriminator_forward.1
= control target key start
LH: loop header
LB: loop body
LE: loop exit
PB: predicated region body
PF: predicated region fallthrough
CT: control target
= control target key end

     0   :  { %vm65_vm0 = vcmask 1043456   ;;  %vm52_vm1 = vcmask 31744   ;;  %v296_v3 = vmov 0   ;;  %v297_v10 = vmov 0.0|0.0   ;;  %s370_s0 = inlined_call_operand.vmem [shape: f32[1,1,4,128], index: 0, kind: input, shape index: {}]   ;;  %s371_s1 = inlined_call_operand.vmem [shape: f32[32,4], index: 1, kind: input, shape index: {}]   ;;  %s372_s2 = inlined_call_operand.vmem [shape: f32[32,1], index: 2, kind: input, shape index: {}]   ;;  %s373_s3 = inlined_call_operand.vmem [shape: f32[1,32], index: 3, kind: input, shape index: {}]   ;;  %s374_s4 = inlined_call_operand.<no memory space> [shape: f32[1], index: 4, kind: input, shape index: {}]   ;;  %s375_s5 = inlined_call_operand.vmem [shape: f32[1,1,128], index: 5, kind: output, shape index: {}]  }
   0x1   :  { %v31_v0 = vld [vmem:[%s370_s0] sm:$0xf]  ;;  %v22_v2 = vld [vmem:[%s371_s1 + $0x8] sm:$0xff]  ;;  %290 = vset.pattern.permute.xlu0 %v296_v3  ;;  %291 = vset.pattern.permute.xlu1 %v296_v3  ;;  %v23_v4 = vld [vmem:[%s371_s1 + $0x10] sm:$0xff]  ;;  %vm298_vm2 = vmmov 0   ;;  %v299_v11 = vmov 0.0   ;;  %v158_v31 = vstv %s374_s4 }
   0x2   :  { %v21_v1 = vld [vmem:[%s371_s1] sm:$0xff]  ;;  %261 = vmatprep.subr.msk.mxu0 %vm65_vm0, %v31_v0  ;;  %v27_v6 = vld [vmem:[%s372_s2 + $0x10] sm:$0xff]  ;;  %v26_v7 = vld [vmem:[%s372_s2 + $0x8] sm:$0xff]  ;;  %280 = vmatprep.subr.bf16.mxu1 %v297_v10  ;;  %vm159_vm3 = vcmask 261120  }
   0x3   :  { %263 = vmatprep.mubr.msk.f32.mxu0 %vm52_vm1, %v21_v1  ;;  %v25_v5 = vld [vmem:[%s372_s2] sm:$0xff]  ;;  %262 = vmatpush3.msk.msra.mxu0 %vm65_vm0, %v31_v0  ;;  %v24_v8 = vld [vmem:[%s371_s1 + $0x18] sm:$0xff] }
   0x4   :  { %34 = vperm.xlu0 %290, %v25_v5   ;;  %264 = vmatmul.mubr.msk.f32.vlgmr.msra.gmra.mrb[0].mxu0 %vm52_vm1, %v22_v2  ;;  %v28_v9 = vld [vmem:[%s372_s2 + $0x18] sm:$0xff]  ;;  %v29_v30 = vld [vmem:[%s373_s3] sm:$0x1] }
   0x5   :  { %44 = vperm.xlu1 %291, %v27_v6   ;;  %266 = vmatprep.mubr.msk.f32.mxu0 %vm52_vm1, %v23_v4 }
   0x6   :  { %277 = vmatprep.mubr.msk.f32.mxu1 %vm298_vm2, %v299_v11 }
   0x8   :  { %39 = vperm.xlu0 %290, %v26_v7   ;;  %267 = vmatmul.mubr.msk.f32.gmra.mrb[2].mxu0 %vm52_vm1, %v24_v8 }
   0x9   :  { %49 = vperm.xlu1 %291, %v28_v9  }
  0x83   :  { %v35_v12 = vpop.permute.xlu0 %34 }
  0x84   :  { %v45_v13 = vpop.permute.xlu1 %44 }
  0x87   :  { %v40_v14 = vpop.permute.xlu0 %39 }
  0x88   :  { %v50_v20 = vpop.permute.xlu1 %49 }
  0xd7   :  { %v265_v15 = vpop.f32.mrb[0].mxu0 }
  0xd8   :  { %v141_v16 = vadd.f32 %v265_v15, %v40_v14  ;;  %v135_v17 = vpop.f32.mrb[1].mxu0 }
  0xd9   :  { %v136_v18 = vadd.f32 %v135_v17, %v35_v12 }
  0xda   :  { %v155_v19 = vmax.f32 %v141_v16, 0.0 }
  0xdb   :  { %v154_v21 = vmax.f32 %v136_v18, 0.0  ;;  %v268_v22 = vpop.f32.mrb[2].mxu0 }
  0xdc   :  { %v151_v23 = vadd.f32 %v268_v22, %v50_v20  ;;  %v145_v24 = vpop.f32.mrb[3].mxu0 }
  0xdd   :  { %v146_v25 = vadd.f32 %v145_v24, %v45_v13  ;;  %v281_v26 = vpack.c.bf16 %v155_v19, %v154_v21 }
  0xde   :  { %v157_v27 = vmax.f32 %v151_v23, 0.0 }
  0xdf   :  { %v156_v28 = vmax.f32 %v146_v25, 0.0  ;;  %282 = vmatpush3.bf16.msra.mxu1 %v281_v26 }
  0xe0   :  { %283 = vmatprep.subr.bf16.mxu1 %v297_v10 }
  0xe1   :  { %v284_v29 = vpack.c.bf16 %v157_v27, %v156_v28 }
  0xe3   :  { %285 = vmatpush3.bf16.msra.mxu1 %v284_v29 }
  0xe6   :  { %278 = vmatmul.mubr.msk.f32.vlgmr.msra.gmra.mrb[0].mxu1 %vm159_vm3, %v29_v30 }
 0x1b9   :  { %v229_v32 = vpop.f32.mrb[0].mxu1 }
 0x1ba   :  { %v230_v33 = vadd.f32 %v229_v32, %v158_v31  ;;  %v279_v34 = vpop.f32.mrb[1].mxu1 }
 0x1bc   :  { %v250_v35 = vmul.f32 -1.442695, %v230_v33 }
 0x1be   :  { %292 = vpow2.f32 %v250_v35 }
 0x1c8   :  { %v293_v36 = vpop.eup %292 }
 0x1c9   :  { %v236_v37 = vadd.f32 1.0, %v293_v36 }
 0x1cb   :  { %294 = vrcp.f32 %v236_v37 }
 0x1d5   :  { %v295_v38 = vpop.eup %294 }
 0x1d6   :  { %239 = vst [vmem:[%s375_s5] sm:$0x1] %v295_v38 }

</bundles_post_ra>
